<compile_context>
chip_gen: v5e
topology: v5e:2x2
jax: 0.10.0
libtpu: 0.0.40
codegen_flags: <defaults>
</compile_context>

<pallas_src>
import jax
import jax.numpy as jnp
from jax.experimental import pallas as pl
from jax.experimental.pallas import tpu as pltpu


# ~2 MiB per x/out block: big enough to amortize the ~600-cycle per-grid-step
# overhead, small enough that double-buffered in/out blocks fit every
# generation's scoped VMEM with large headroom.
_MAX_BLOCK_BYTES = 2 * 1024 * 1024


def _posenc_kernel(x_ref, pe_ref, o_ref):
    # x_ref: (TB, TL)  pe_ref: (1, TL)  -> broadcast add over rows.
    # Lane-dense full-width stores; astype handles mixed x/emb dtypes.
    o_ref[...] = (x_ref[...] + pe_ref[...]).astype(o_ref.dtype)


def _largest_divisor_multiple(dim, base, cap):
    """Largest t <= min(dim, cap) with t % base == 0 and dim % t == 0, else None."""
    best = None
    t = base
    hi = min(dim, cap)
    while t <= hi:
        if dim % t == 0:
            best = t
        t += base
    return best


def _pick_tiles(n_rows, n_cols, itemsize, max_block_bytes=_MAX_BLOCK_BYTES):
    """Choose (row_tile, lane_tile) for a (n_rows, n_cols) lane-dense slab.

    Tiles always satisfy the (8, 128) constraint: each tile dim is either a
    multiple of 8 / 128 (as appropriate) or the full array extent.
    """
    max_elems = max(1, max_block_bytes // itemsize)
    # Whole slab fits in one block: zero tiling, grid collapses to (1, 1).
    if n_rows * n_cols <= max_elems:
        return n_rows, n_cols
    # Full lane-dense rows, tile only the row axis (multiples of 8).
    if n_cols <= max_elems:
        cap_rows = max(1, max_elems // n_cols)
        tb = _largest_divisor_multiple(n_rows, 8, cap_rows)
        if tb is not None:
            return tb, n_cols
    # Tile both axes: rows in multiples of 8 (or full extent), lanes in
    # multiples of 128 (or full extent).
    cap_rows = max(8, max_elems // 128)
    tb = _largest_divisor_multiple(n_rows, 8, cap_rows) or n_rows
    cap_cols = max(128, max_elems // tb)
    tl = _largest_divisor_multiple(n_cols, 128, cap_cols) or n_cols
    return tb, tl


def positional_encoding_forward(x, emb_table, *, batched=True, donate_x=False):
    """Adds positional embeddings emb_table[:seq_len] to x.

    x: [B, S, D] if batched else [S, D]
    emb_table: [num_positions, D]
    donate_x: if the caller donates x (jit donate_argnums), alias input->output
              so the add happens in place (halves peak HBM footprint).
    """
    x_b = x if batched else x[None, ...]
    B, S, D = x_b.shape
    num_positions = emb_table.shape[0]
    if S > num_positions:
        raise ValueError(
            f"seq_len {S} exceeds num_positions {num_positions} of the embedding table"
        )

    SD = S * D
    # Lane-dense 2-D views. Collapsing adjacent dims is a free bitcast in XLA;
    # the table slice/reshape touches only S*D elements (tiny).
    x2 = x_b.reshape(B, SD)
    pe2 = emb_table[:S, :].reshape(1, SD)

    itemsize = x_b.dtype.itemsize
    pe_itemsize = emb_table.dtype.itemsize
    tb, tl = _pick_tiles(B, SD, itemsize)
    grid = (SD // tl, B // tb)  # lane-tile axis OUTER so pe stays resident inner

    # VMEM budget: double-buffered x-in and out blocks + resident pe block.
    block_bytes = tb * tl * itemsize
    need = 4 * block_bytes + 2 * tl * pe_itemsize
    vmem_limit = int(min(max(2 * need, 32 * 1024 * 1024), 48 * 1024 * 1024))

    cost = pl.CostEstimate(
        flops=B * SD,
        transcendentals=0,
        bytes_accessed=2 * B * SD * itemsize + SD * pe_itemsize,
    )

    out2 = pl.pallas_call(
        _posenc_kernel,
        out_shape=jax.ShapeDtypeStruct((B, SD), x_b.dtype),
        grid=grid,
        in_specs=[
            pl.BlockSpec((tb, tl), lambda j, i: (i, j)),   # x slab tile
            pl.BlockSpec((1, tl), lambda j, i: (0, j)),    # pe tile (constant over rows)
        ],
        out_specs=pl.BlockSpec((tb, tl), lambda j, i: (i, j)),
        compiler_params=pltpu.CompilerParams(
            dimension_semantics=("parallel", "parallel"),
            vmem_limit_bytes=vmem_limit,
        ),
        cost_estimate=cost,
        input_output_aliases=({0: 0} if donate_x else {}),
    )(x2, pe2)

    out = out2.reshape(B, S, D)
    return out if batched else out[0]


if __name__ == "__main__":
    # Small shapes consistent with the module: batch=2, seq=8, d_model=32, num_positions=20
    B, S, D, NUM_POS = 2, 8, 32, 20

    key = jax.random.PRNGKey(0)
    k_x, k_emb = jax.random.split(key)

    # nn.Embedding default init is N(0, 1)
    emb_table = jax.random.normal(k_emb, (NUM_POS, D), dtype=jnp.float32)
    x = jax.random.normal(k_x, (B, S, D), dtype=jnp.float32)

    # Batched path
    out = jax.block_until_ready(positional_encoding_forward(x, emb_table, batched=True))
    ref = x + emb_table[:S, :][None, :, :]
    assert out.shape == x.shape and out.dtype == x.dtype
    assert jnp.allclose(out, ref, atol=1e-6), "batched mismatch vs reference"

    # Unbatched path
    x_unb = jax.random.normal(jax.random.PRNGKey(1), (S, D), dtype=jnp.float32)
    out_unb = jax.block_until_ready(
        positional_encoding_forward(x_unb, emb_table, batched=False)
    )
    assert jnp.allclose(out_unb, x_unb + emb_table[:S, :], atol=1e-6), "unbatched mismatch"

    # Mixed-dtype path (bf16 activations, f32 table) exercises the in-kernel astype
    x_bf16 = x.astype(jnp.bfloat16)
    out_bf16 = jax.block_until_ready(
        positional_encoding_forward(x_bf16, emb_table, batched=True)
    )
    ref_bf16 = (x_bf16 + emb_table[:S, :][None, :, :]).astype(jnp.bfloat16)
    assert out_bf16.dtype == jnp.bfloat16
    assert jnp.allclose(
        out_bf16.astype(jnp.float32), ref_bf16.astype(jnp.float32), atol=1e-2
    ), "bf16 mismatch vs reference"

    print("KERNEL_OK")
</pallas_src>

<mosaic_0001>
module attributes {stable_mosaic.version = 11 : i64} {
  func.func @_posenc_kernel(%arg0: i32, %arg1: i32, %arg2: memref<2x256xf32, #tpu.memory_space<vmem>>, %arg3: memref<1x256xf32, #tpu.memory_space<vmem>>, %arg4: memref<2x256xf32, #tpu.memory_space<vmem>>) attributes {dimension_semantics = [#tpu.dimension_semantics<parallel>, #tpu.dimension_semantics<parallel>], iteration_bounds = array<i64: 1, 1>, scalar_prefetch = 0 : i64, scratch_operands = 0 : i64, tpu.core_type = #tpu.core_type<tc>, window_params = [{transform_indices = @transform_0, window_bounds = array<i64: 2, 256>}, {transform_indices = @transform_1, window_bounds = array<i64: 1, 256>}, {transform_indices = @transform_2, window_bounds = array<i64: 2, 256>}]} {
    %c0 = arith.constant 0 : index
    %c0_0 = arith.constant 0 : index
    %0 = vector.load %arg2[%c0, %c0_0] : memref<2x256xf32, #tpu.memory_space<vmem>>, vector<2x256xf32>
    %c0_1 = arith.constant 0 : index
    %c0_2 = arith.constant 0 : index
    %1 = vector.load %arg3[%c0_1, %c0_2] : memref<1x256xf32, #tpu.memory_space<vmem>>, vector<1x256xf32>
    %2 = vector.broadcast %1 : vector<1x256xf32> to vector<2x256xf32>
    %3 = arith.addf %0, %2 : vector<2x256xf32>
    %c0_3 = arith.constant 0 : index
    %c0_4 = arith.constant 0 : index
    %4 = vector.load %arg4[%c0_3, %c0_4] : memref<2x256xf32, #tpu.memory_space<vmem>>, vector<2x256xf32>
    tpu.vector_store %arg4[%c0_3, %c0_4], %3 {strides = array<i32>} : memref<2x256xf32, #tpu.memory_space<vmem>>, vector<2x256xf32>,
    return
  }
  func.func @transform_0(%arg0: i32, %arg1: i32) -> (i32, i32) {
    %c0_i32 = arith.constant 0 : i32
    return %arg1, %arg0 : i32, i32
  }
  func.func @transform_1(%arg0: i32, %arg1: i32) -> (i32, i32) {
    %c0_i32 = arith.constant 0 : i32
    %c0_i32_0 = arith.constant 0 : i32
    return %c0_i32, %arg0 : i32, i32
  }
  func.func @transform_2(%arg0: i32, %arg1: i32) -> (i32, i32) {
    %c0_i32 = arith.constant 0 : i32
    return %arg1, %arg0 : i32, i32
  }
}

</mosaic_0001>

<bundles_post_ra>
// kernel: tpu_custom_call.1
= control target key start
LH: loop header
LB: loop body
LE: loop exit
PB: predicated region body
PF: predicated region fallthrough
CT: control target
= control target key end

     0   :  { %7 = vsyncpa [#allocation3], 0  ;;  %s177_s0 = inlined_call_operand.hbm [shape: f32[2,256], index: 0, kind: input, shape index: {}]   ;;  %s178_s1 = inlined_call_operand.hbm [shape: f32[1,256], index: 1, kind: input, shape index: {}]   ;;  %s179_s2 = inlined_call_operand.hbm [shape: f32[2,256], index: 2, kind: output, shape index: {}]  }
   0x1   :  { %8 = vsyncpa [#allocation6], 0 }
   0x2   :  { %9 = vsyncpa [#allocation4], 0  ;;  %s15_s11 = sshll.u32 %s177_s0, 4  ;;  %s150_s12 = smov [#allocation2]   ;;  %s16_s11 = int_to_ptr.hbm [resolvable:$true] %s15_s11 }
   0x3   :  { %s17_s13 = sshll.u32 %s150_s12, 4  ;;  %s26_s16 = sshll.u32 %s178_s1, 4  ;;  %s18_s13 = int_to_ptr.vmem [resolvable:$true] %s17_s13  ;;  %s27_s16 = int_to_ptr.hbm [resolvable:$true] %s26_s16 }
   0x4   :  { %20 = dma.hbm_to_vmem [thread:$0]  %s16_s11, 64, %s18_s13, [#allocation3]  }
   0x5   :  { %s151_s17 = smov [#allocation5]  }
   0x6   :  { %s28_s18 = sshll.u32 %s151_s17, 4  ;;  %s29_s18 = int_to_ptr.vmem [resolvable:$true] %s28_s18 }
   0x7   :  { %31 = dma.hbm_to_vmem [thread:$0]  %s27_s16, 32, %s29_s18, [#allocation6]  }
   0x8   :  { %144 = dma.done.wait [#allocation3], 64  }
   0x9   :  { %145 = vsyncadd [#allocation3], 4294967232 }
   0xa   :  { %146 = dma.done.wait [#allocation6], 32  }
   0xb   :  { %147 = vsyncadd [#allocation6], 4294967264  ;;  %v41_v0 = vld [vmem:[#allocation5] sm:$0x3]  ;;  %vm46_vm0 = vcmask 1041408   ;;  %s152_s0 = smov [#allocation7]  }
   0xc   :  { %v43_v1 = vperm.slane %v41_v0, 0  ;;  %v44_v2 = vperm.slane %v41_v0, 1  ;;  %v40_v3 = vld [vmem:[#allocation2] sm:$0xf]  ;;  %s56_s19 = sshll.u32 %s152_s0, 4  ;;  %s58_s21 = sshll.u32 %s179_s2, 4  ;;  %s57_s19 = int_to_ptr.vmem [resolvable:$true] %s56_s19  ;;  %s59_s21 = int_to_ptr.hbm [resolvable:$true] %s58_s21 }
   0xe   :  { %v45_v4 = vrot.slane %v44_v2, 6 }
  0x10   :  { %v47_v5 = vsel %vm46_vm0, %v43_v1, %v45_v4 }
  0x11   :  { %v49_v6 = vadd.f32 %v47_v5, %v40_v3 }
  0x13   :  { %50 = vst [vmem:[#allocation7] sm:$0xf] %v49_v6 }
  0x14   :  { %61 = dma.vmem_to_hbm [thread:$0]  %s57_s19, 64, %s59_s21, [#allocation4]  }
  0x15   :  { %148 = dma.done.wait [#allocation4], 64  }
  0x16   :  { %149 = vsyncadd [#allocation4], 4294967232 }
  0x17   :  { %66 = vsyncpa [#allocation3], 1 }
  0x18   :  { %67 = vsyncpa [#allocation6], 1 }
  0x19   :  { %68 = vsyncpa [#allocation4], 1 }

</bundles_post_ra>
